<compile_context>
chip_gen: v7x
topology: tpu7x:2x2x1
jax: 0.10.0
libtpu: 0.0.40
codegen_flags: <defaults>
</compile_context>

<pallas_src>
import math

import jax
import jax.numpy as jnp
from jax.experimental import pallas as pl
from jax.experimental.pallas import tpu as pltpu

VMEM_LIMIT_BYTES = 64 * 1024 * 1024  # raise the (32 MiB v6e / 16 MiB v5e) scoped default


# ---------------------------------------------------------------------------
# Tile pickers (dtype-aware sublane quantum, lane quantum 128)
# ---------------------------------------------------------------------------
def _pick_tile(n, pref, dtype):
    """Largest row tile <= pref dividing n, multiple of the dtype sublane quantum."""
    quantum = 8 * max(1, 4 // jnp.dtype(dtype).itemsize)  # f32:8, bf16:16, int8:32
    if n <= pref:
        return n                      # full dim is always a legal block
    start = (pref // quantum) * quantum
    for t in range(start, quantum - 1, -quantum):
        if n % t == 0:
            return t
    return n  # fallback: full dim (legal; may be VMEM-hungry for awkward n)


def _pick_lane_tile(n, pref):
    """Largest lane (last-dim) tile <= pref dividing n, multiple of 128."""
    if n <= pref:
        return n
    start = (pref // 128) * 128
    for t in range(start, 127, -128):
        if n % t == 0:
            return t
    return n


# ---------------------------------------------------------------------------
# Pallas kernels
# ---------------------------------------------------------------------------
def qkv_proj_kernel(xq_ref, xk_ref, xv_ref, w_ref, b_ref, oq_ref, ok_ref, ov_ref):
    # General path: xq/xk/xv (tm, D); w (3, D, tn); b (3, 1, tn) f32; out (tm, tn).
    for idx, (x_ref, o_ref) in enumerate(
        ((xq_ref, oq_ref), (xk_ref, ok_ref), (xv_ref, ov_ref))
    ):
        y = jnp.dot(x_ref[...], w_ref[idx], preferred_element_type=jnp.float32)
        o_ref[...] = (y + b_ref[idx]).astype(o_ref.dtype)


def qkv_fused_kernel(x_ref, w_ref, b_ref, oq_ref, ok_ref, ov_ref):
    # Self-attention fast path: x (tm, D); w (D, 3D); b (1, 3D) f32.
    y = jnp.dot(x_ref[...], w_ref[...], preferred_element_type=jnp.float32)
    y = y + b_ref[...]
    d = oq_ref.shape[-1]
    oq_ref[...] = y[:, :d].astype(oq_ref.dtype)
    ok_ref[...] = y[:, d:2 * d].astype(ok_ref.dtype)
    ov_ref[...] = y[:, 2 * d:3 * d].astype(ov_ref.dtype)


def make_sdpa_kernel(n_head, d_head):
    """Flash-style SDPA on lane-dense (tq, D) / (tk, D) blocks.

    Head split/concat happens here via static column slices (no XLA
    transposes, no sub-128-lane HBM stores).  Online softmax statistics are
    kept per head in f32 VMEM scratch.
    """
    scale = 1.0 / math.sqrt(d_head)

    def kernel(q_ref, k_ref, v_ref, o_ref, m_sc, l_sc, acc_sc):
        kv_idx = pl.program_id(2)

        @pl.when(kv_idx == 0)
        def _init():
            m_sc[...] = jnp.full(m_sc.shape, -jnp.inf, jnp.float32)
            l_sc[...] = jnp.zeros(l_sc.shape, jnp.float32)
            acc_sc[...] = jnp.zeros(acc_sc.shape, jnp.float32)

        for h in range(n_head):
            lo, hi = h * d_head, (h + 1) * d_head
            # Scale folded into q: O(tq*Dh) multiplies instead of O(tq*tk).
            qh = q_ref[:, lo:hi] * scale            # (tq, Dh) compute dtype
            kh = k_ref[:, lo:hi]                    # (tk, Dh)
            vh = v_ref[:, lo:hi]                    # (tk, Dh)
            # QK^T by contracting the shared Dh axis (no explicit transpose).
            s = jax.lax.dot_general(
                qh, kh, (((1,), (1,)), ((), ())),
                preferred_element_type=jnp.float32)  # (tq, tk) f32
            # TODO(synk): optional attention mask would be added to s here.
            m_prev = m_sc[h]                                           # (tq, 1) f32
            m_new = jnp.maximum(m_prev, jnp.max(s, axis=-1, keepdims=True))
            alpha = jnp.exp(m_prev - m_new)                            # f32 (EUP)
            p = jnp.exp(s - m_new)                                     # f32 (EUP)
            l_sc[h] = alpha * l_sc[h] + jnp.sum(p, axis=-1, keepdims=True)
            acc_sc[h] = alpha * acc_sc[h] + jnp.dot(
                p.astype(vh.dtype), vh, preferred_element_type=jnp.float32)
            m_sc[h] = m_new

        @pl.when(kv_idx == pl.num_programs(2) - 1)
        def _finalize():
            for h in range(n_head):
                lo, hi = h * d_head, (h + 1) * d_head
                # Normalize after the PV matmul; approx reciprocal uses the
                # otherwise-idle EUP slot.
                inv = pl.reciprocal(l_sc[h], approx=True)
                o_ref[:, lo:hi] = (acc_sc[h] * inv).astype(o_ref.dtype)

    return kernel


def linear_kernel(x_ref, w_ref, b_ref, o_ref):
    y = jnp.dot(x_ref[...], w_ref[...], preferred_element_type=jnp.float32)
    o_ref[...] = (y + b_ref[...]).astype(o_ref.dtype)


# ---------------------------------------------------------------------------
# pallas_call wrappers
# ---------------------------------------------------------------------------
def pallas_qkv_proj(xq, xk, xv, w_stack, b_stack, out_dtype,
                    *, tm_pref=512, tn_pref=512):
    """xq/xk/xv: (M, D); w_stack: (3, D, D); b_stack: (3, 1, D) f32 -> 3x (M, D)."""
    M, D = xq.shape
    tm = _pick_tile(M, tm_pref, xq.dtype)
    tn = _pick_lane_tile(D, tn_pref)
    x_spec = pl.BlockSpec((tm, D), lambda i, j: (i, 0))
    w_spec = pl.BlockSpec((3, D, tn), lambda i, j: (0, 0, j))
    b_spec = pl.BlockSpec((3, 1, tn), lambda i, j: (0, 0, j))
    o_spec = pl.BlockSpec((tm, tn), lambda i, j: (i, j))
    out_sd = jax.ShapeDtypeStruct((M, D), out_dtype)
    in_item = jnp.dtype(xq.dtype).itemsize
    out_item = jnp.dtype(out_dtype).itemsize
    cost = pl.CostEstimate(
        flops=2 * 3 * M * D * D,
        transcendentals=0,
        bytes_accessed=3 * M * D * in_item + 3 * D * D * jnp.dtype(w_stack.dtype).itemsize
        + 3 * D * 4 + 3 * M * D * out_item)
    return pl.pallas_call(
        qkv_proj_kernel,
        out_shape=(out_sd, out_sd, out_sd),
        grid=(M // tm, D // tn),
        in_specs=[x_spec, x_spec, x_spec, w_spec, b_spec],
        out_specs=(o_spec, o_spec, o_spec),
        compiler_params=pltpu.CompilerParams(
            dimension_semantics=("parallel", "parallel"),
            vmem_limit_bytes=VMEM_LIMIT_BYTES),
        cost_estimate=cost,
    )(xq, xk, xv, w_stack, b_stack)


def pallas_qkv_proj_fused(x, w_fused, b_fused, out_dtype, *, tm_pref=512):
    """Self-attention fast path. x: (M, D); w_fused: (D, 3D); b_fused: (1, 3D)."""
    M, D = x.shape
    tm = _pick_tile(M, tm_pref, x.dtype)
    out_sd = jax.ShapeDtypeStruct((M, D), out_dtype)
    o_spec = pl.BlockSpec((tm, D), lambda i: (i, 0))
    in_item = jnp.dtype(x.dtype).itemsize
    out_item = jnp.dtype(out_dtype).itemsize
    cost = pl.CostEstimate(
        flops=2 * M * D * 3 * D,
        transcendentals=0,
        bytes_accessed=M * D * in_item + 3 * D * D * jnp.dtype(w_fused.dtype).itemsize
        + 3 * D * 4 + 3 * M * D * out_item)
    return pl.pallas_call(
        qkv_fused_kernel,
        out_shape=(out_sd, out_sd, out_sd),
        grid=(M // tm,),
        in_specs=[
            pl.BlockSpec((tm, D), lambda i: (i, 0)),
            pl.BlockSpec((D, 3 * D), lambda i: (0, 0)),
            pl.BlockSpec((1, 3 * D), lambda i: (0, 0)),
        ],
        out_specs=(o_spec, o_spec, o_spec),
        compiler_params=pltpu.CompilerParams(
            dimension_semantics=("parallel",),
            vmem_limit_bytes=VMEM_LIMIT_BYTES),
        cost_estimate=cost,
    )(x, w_fused, b_fused)


def pallas_sdpa(q, k, v, n_head, *, tq_pref=512, tk_pref=512):
    """q, k, v: (B, L, D) lane-dense -> (B, L, D). Flash-style KV tiling."""
    B, L, D = q.shape
    assert D % n_head == 0
    d_head = D // n_head
    tq = _pick_tile(L, tq_pref, q.dtype)
    tk = _pick_tile(L, tk_pref, k.dtype)
    q_spec = pl.BlockSpec((None, tq, D), lambda b, qi, ki: (b, qi, 0))
    kv_spec = pl.BlockSpec((None, tk, D), lambda b, qi, ki: (b, ki, 0))
    o_spec = pl.BlockSpec((None, tq, D), lambda b, qi, ki: (b, qi, 0))
    item = jnp.dtype(q.dtype).itemsize
    cost = pl.CostEstimate(
        flops=4 * B * n_head * L * L * d_head,
        transcendentals=B * n_head * L * L,      # exp per score element
        bytes_accessed=4 * B * L * D * item)
    return pl.pallas_call(
        make_sdpa_kernel(n_head, d_head),
        out_shape=jax.ShapeDtypeStruct((B, L, D), q.dtype),
        grid=(B, L // tq, L // tk),
        in_specs=[q_spec, kv_spec, kv_spec],
        out_specs=o_spec,
        scratch_shapes=[
            pltpu.VMEM((n_head, tq, 1), jnp.float32),       # running max m
            pltpu.VMEM((n_head, tq, 1), jnp.float32),       # running denom l
            pltpu.VMEM((n_head, tq, d_head), jnp.float32),  # running PV acc
        ],
        compiler_params=pltpu.CompilerParams(
            dimension_semantics=("parallel", "parallel", "arbitrary"),
            vmem_limit_bytes=VMEM_LIMIT_BYTES),
        cost_estimate=cost,
    )(q, k, v)


def pallas_linear(x, w, b, out_dtype, *, tm_pref=512, tn_pref=512):
    """x: (M, D_in), w: (D_in, D_out), b: (1, D_out) f32 -> (M, D_out)."""
    M, D_in = x.shape
    D_out = w.shape[1]
    tm = _pick_tile(M, tm_pref, x.dtype)
    tn = _pick_lane_tile(D_out, tn_pref)
    in_item = jnp.dtype(x.dtype).itemsize
    out_item = jnp.dtype(out_dtype).itemsize
    cost = pl.CostEstimate(
        flops=2 * M * D_in * D_out,
        transcendentals=0,
        bytes_accessed=M * D_in * in_item + D_in * D_out * jnp.dtype(w.dtype).itemsize
        + D_out * 4 + M * D_out * out_item)
    return pl.pallas_call(
        linear_kernel,
        out_shape=jax.ShapeDtypeStruct((M, D_out), out_dtype),
        grid=(M // tm, D_out // tn),
        in_specs=[
            pl.BlockSpec((tm, D_in), lambda i, j: (i, 0)),
            pl.BlockSpec((D_in, tn), lambda i, j: (0, j)),
            pl.BlockSpec((1, tn), lambda i, j: (0, j)),
        ],
        out_specs=pl.BlockSpec((tm, tn), lambda i, j: (i, j)),
        compiler_params=pltpu.CompilerParams(
            dimension_semantics=("parallel", "parallel"),
            vmem_limit_bytes=VMEM_LIMIT_BYTES),
        cost_estimate=cost,
    )(x, w, b)


# ---------------------------------------------------------------------------
# Parameter prep (one-time) and forward pass
# ---------------------------------------------------------------------------
def prepare_params(params, compute_dtype=jnp.bfloat16):
    """Hoisted out of the forward: stack / concat / cast the weights once."""
    cd = jnp.dtype(compute_dtype)
    w_q, w_k, w_v = params["w_q_w"], params["w_k_w"], params["w_v_w"]
    b_q, b_k, b_v = params["w_q_b"], params["w_k_b"], params["w_v_b"]
    return {
        "compute_dtype": cd,
        # general (q, k, v distinct) path
        "w_qkv_stack": jnp.stack([w_q, w_k, w_v]).astype(cd),                 # (3, D, D)
        "b_qkv_stack": jnp.stack([b_q, b_k, b_v])[:, None, :].astype(jnp.float32),
        # self-attention fast path (column-concatenated weights)
        "w_qkv_fused": jnp.concatenate([w_q, w_k, w_v], axis=1).astype(cd),   # (D, 3D)
        "b_qkv_fused": jnp.concatenate([b_q, b_k, b_v])[None, :].astype(jnp.float32),
        "w_concat": params["w_concat_w"].astype(cd),                          # (D, D)
        "b_concat": params["w_concat_b"][None, :].astype(jnp.float32),        # (1, D)
    }


def multi_head_attention(q, k, v, prep, n_head):
    """Forward pass matching the PyTorch MultiHeadAttention (mask=None)."""
    B, L, D = q.shape
    assert D % n_head == 0
    M = B * L
    cd = prep["compute_dtype"]
    out_dtype = q.dtype

    if (q is k) and (k is v):
        # Self-attention: one (tm, D) x (D, 3D) matmul per row tile.
        qp, kp, vp = pallas_qkv_proj_fused(
            q.reshape(M, D).astype(cd),
            prep["w_qkv_fused"], prep["b_qkv_fused"], cd)
    else:
        qp, kp, vp = pallas_qkv_proj(
            q.reshape(M, D).astype(cd),
            k.reshape(M, D).astype(cd),
            v.reshape(M, D).astype(cd),
            prep["w_qkv_stack"], prep["b_qkv_stack"], cd)

    # Head split/concat happen INSIDE the SDPA kernel via per-head column
    # slices of the lane-dense (.., D) activations — no XLA transposes and
    # full-lane HBM stores.
    attn = pallas_sdpa(qp.reshape(B, L, D), kp.reshape(B, L, D),
                       vp.reshape(B, L, D), n_head)             # (B, L, D)

    out = pallas_linear(attn.reshape(M, D), prep["w_concat"],
                        prep["b_concat"], out_dtype)
    return out.reshape(B, L, D)


# ---------------------------------------------------------------------------
# Pure-JAX reference (for verification)
# ---------------------------------------------------------------------------
def reference_mha(q, k, v, params, n_head):
    B, L, D = q.shape
    Dh = D // n_head

    def lin(x, name):
        return x @ params[name + "_w"] + params[name + "_b"]

    def split(t):
        return t.reshape(B, L, n_head, Dh).transpose(0, 2, 1, 3)

    qp, kp, vp = split(lin(q, "w_q")), split(lin(k, "w_k")), split(lin(v, "w_v"))
    s = jnp.einsum("bhqd,bhkd->bhqk", qp, kp) / math.sqrt(Dh)
    p = jax.nn.softmax(s, axis=-1)
    o = jnp.einsum("bhqk,bhkd->bhqd", p, vp)
    o = o.transpose(0, 2, 1, 3).reshape(B, L, D)
    return lin(o, "w_concat")


# ---------------------------------------------------------------------------
# Main
# ---------------------------------------------------------------------------
if __name__ == "__main__":
    d_model = 32
    n_head = 4
    batch = 2
    seq = 8

    key = jax.random.PRNGKey(0)
    keys = jax.random.split(key, 12)

    bound = 1.0 / math.sqrt(d_model)   # torch nn.Linear default init scale
    params = {}
    for i, name in enumerate(["w_q", "w_k", "w_v", "w_concat"]):
        params[name + "_w"] = jax.random.uniform(
            keys[2 * i], (d_model, d_model), jnp.float32, -bound, bound)
        params[name + "_b"] = jax.random.uniform(
            keys[2 * i + 1], (d_model,), jnp.float32, -bound, bound)

    q = jax.random.normal(keys[8], (batch, seq, d_model), jnp.float32)
    k = jax.random.normal(keys[9], (batch, seq, d_model), jnp.float32)
    v = jax.random.normal(keys[10], (batch, seq, d_model), jnp.float32)

    ref = reference_mha(q, k, v, params, n_head)
    ref_self = reference_mha(q, q, q, params, n_head)

    # 1) f32 compute path (tight tolerance; slack only for approx reciprocal).
    prep_f32 = prepare_params(params, compute_dtype=jnp.float32)
    out_f32 = jax.block_until_ready(multi_head_attention(q, k, v, prep_f32, n_head))
    assert out_f32.shape == (batch, seq, d_model)
    assert jnp.allclose(out_f32, ref, atol=5e-3, rtol=5e-3), "f32 path mismatch"

    # 2) bf16 compute path (MXU-native operands; f32 accumulation / softmax).
    prep_bf16 = prepare_params(params, compute_dtype=jnp.bfloat16)
    out_bf16 = jax.block_until_ready(multi_head_attention(q, k, v, prep_bf16, n_head))
    assert jnp.allclose(out_bf16, ref, atol=5e-2, rtol=5e-2), "bf16 path mismatch"

    # 3) self-attention fast path (fused (D, 3D) projection), bf16.
    out_self = jax.block_until_ready(multi_head_attention(q, q, q, prep_bf16, n_head))
    assert jnp.allclose(out_self, ref_self, atol=5e-2, rtol=5e-2), "self-attn mismatch"

    print("KERNEL_OK")
</pallas_src>

<mosaic_0001>
module attributes {stable_mosaic.version = 11 : i64} {
  func.func @qkv_proj_kernel(%arg0: i32, %arg1: i32, %arg2: memref<16x32xf32, #tpu.memory_space<vmem>>, %arg3: memref<16x32xf32, #tpu.memory_space<vmem>>, %arg4: memref<16x32xf32, #tpu.memory_space<vmem>>, %arg5: memref<3x32x32xf32, #tpu.memory_space<vmem>>, %arg6: memref<3x1x32xf32, #tpu.memory_space<vmem>>, %arg7: memref<16x32xf32, #tpu.memory_space<vmem>>, %arg8: memref<16x32xf32, #tpu.memory_space<vmem>>, %arg9: memref<16x32xf32, #tpu.memory_space<vmem>>) attributes {dimension_semantics = [#tpu.dimension_semantics<parallel>, #tpu.dimension_semantics<parallel>], iteration_bounds = array<i64: 1, 1>, scalar_prefetch = 0 : i64, scratch_operands = 0 : i64, tpu.core_type = #tpu.core_type<tc>, window_params = [{transform_indices = @transform_0, window_bounds = array<i64: 16, 32>}, {transform_indices = @transform_1, window_bounds = array<i64: 16, 32>}, {transform_indices = @transform_2, window_bounds = array<i64: 16, 32>}, {transform_indices = @transform_3, window_bounds = array<i64: 3, 32, 32>}, {transform_indices = @transform_4, window_bounds = array<i64: 3, 1, 32>}, {transform_indices = @transform_5, window_bounds = array<i64: 16, 32>}, {transform_indices = @transform_6, window_bounds = array<i64: 16, 32>}, {transform_indices = @transform_7, window_bounds = array<i64: 16, 32>}]} {
    %c0 = arith.constant 0 : index
    %c0_0 = arith.constant 0 : index
    %0 = vector.load %arg2[%c0, %c0_0] : memref<16x32xf32, #tpu.memory_space<vmem>>, vector<16x32xf32>
    %c0_1 = arith.constant 0 : index
    %c0_2 = arith.constant 0 : index
    %c0_3 = arith.constant 0 : index
    %1 = vector.load %arg5[%c0_1, %c0_2, %c0_3] : memref<3x32x32xf32, #tpu.memory_space<vmem>>, vector<1x32x32xf32>
    %2 = vector.shape_cast %1 : vector<1x32x32xf32> to vector<32x32xf32>
    %cst = arith.constant dense<0.000000e+00> : vector<16x32xf32>
    %3 = tpu.matmul %0, %2, %cst {dimension_numbers = #tpu.dot_dimension_numbers<[1], [0], [0], [1], [0, 0, 1, 1], [], []>} : vector<16x32xf32>, vector<32x32xf32>, vector<16x32xf32> -> vector<16x32xf32>
    %c0_4 = arith.constant 0 : index
    %c0_5 = arith.constant 0 : index
    %c0_6 = arith.constant 0 : index
    %4 = vector.load %arg6[%c0_4, %c0_5, %c0_6] : memref<3x1x32xf32, #tpu.memory_space<vmem>>, vector<1x1x32xf32>
    %5 = vector.shape_cast %4 : vector<1x1x32xf32> to vector<1x32xf32>
    %6 = vector.broadcast %5 : vector<1x32xf32> to vector<16x32xf32>
    %7 = arith.addf %3, %6 : vector<16x32xf32>
    %c0_7 = arith.constant 0 : index
    %c0_8 = arith.constant 0 : index
    %8 = vector.load %arg7[%c0_7, %c0_8] : memref<16x32xf32, #tpu.memory_space<vmem>>, vector<16x32xf32>
    tpu.vector_store %arg7[%c0_7, %c0_8], %7 {strides = array<i32>} : memref<16x32xf32, #tpu.memory_space<vmem>>, vector<16x32xf32>,
    %c0_9 = arith.constant 0 : index
    %c0_10 = arith.constant 0 : index
    %9 = vector.load %arg3[%c0_9, %c0_10] : memref<16x32xf32, #tpu.memory_space<vmem>>, vector<16x32xf32>
    %c1 = arith.constant 1 : index
    %c0_11 = arith.constant 0 : index
    %c0_12 = arith.constant 0 : index
    %10 = vector.load %arg5[%c1, %c0_11, %c0_12] : memref<3x32x32xf32, #tpu.memory_space<vmem>>, vector<1x32x32xf32>
    %11 = vector.shape_cast %10 : vector<1x32x32xf32> to vector<32x32xf32>
    %cst_13 = arith.constant dense<0.000000e+00> : vector<16x32xf32>
    %12 = tpu.matmul %9, %11, %cst_13 {dimension_numbers = #tpu.dot_dimension_numbers<[1], [0], [0], [1], [0, 0, 1, 1], [], []>} : vector<16x32xf32>, vector<32x32xf32>, vector<16x32xf32> -> vector<16x32xf32>
    %c1_14 = arith.constant 1 : index
    %c0_15 = arith.constant 0 : index
    %c0_16 = arith.constant 0 : index
    %13 = vector.load %arg6[%c1_14, %c0_15, %c0_16] : memref<3x1x32xf32, #tpu.memory_space<vmem>>, vector<1x1x32xf32>
    %14 = vector.shape_cast %13 : vector<1x1x32xf32> to vector<1x32xf32>
    %15 = vector.broadcast %14 : vector<1x32xf32> to vector<16x32xf32>
    %16 = arith.addf %12, %15 : vector<16x32xf32>
    %c0_17 = arith.constant 0 : index
    %c0_18 = arith.constant 0 : index
    %17 = vector.load %arg8[%c0_17, %c0_18] : memref<16x32xf32, #tpu.memory_space<vmem>>, vector<16x32xf32>
    tpu.vector_store %arg8[%c0_17, %c0_18], %16 {strides = array<i32>} : memref<16x32xf32, #tpu.memory_space<vmem>>, vector<16x32xf32>,
    %c0_19 = arith.constant 0 : index
    %c0_20 = arith.constant 0 : index
    %18 = vector.load %arg4[%c0_19, %c0_20] : memref<16x32xf32, #tpu.memory_space<vmem>>, vector<16x32xf32>
    %c2 = arith.constant 2 : index
    %c0_21 = arith.constant 0 : index
    %c0_22 = arith.constant 0 : index
    %19 = vector.load %arg5[%c2, %c0_21, %c0_22] : memref<3x32x32xf32, #tpu.memory_space<vmem>>, vector<1x32x32xf32>
    %20 = vector.shape_cast %19 : vector<1x32x32xf32> to vector<32x32xf32>
    %cst_23 = arith.constant dense<0.000000e+00> : vector<16x32xf32>
    %21 = tpu.matmul %18, %20, %cst_23 {dimension_numbers = #tpu.dot_dimension_numbers<[1], [0], [0], [1], [0, 0, 1, 1], [], []>} : vector<16x32xf32>, vector<32x32xf32>, vector<16x32xf32> -> vector<16x32xf32>
    %c2_24 = arith.constant 2 : index
    %c0_25 = arith.constant 0 : index
    %c0_26 = arith.constant 0 : index
    %22 = vector.load %arg6[%c2_24, %c0_25, %c0_26] : memref<3x1x32xf32, #tpu.memory_space<vmem>>, vector<1x1x32xf32>
    %23 = vector.shape_cast %22 : vector<1x1x32xf32> to vector<1x32xf32>
    %24 = vector.broadcast %23 : vector<1x32xf32> to vector<16x32xf32>
    %25 = arith.addf %21, %24 : vector<16x32xf32>
    %c0_27 = arith.constant 0 : index
    %c0_28 = arith.constant 0 : index
    %26 = vector.load %arg9[%c0_27, %c0_28] : memref<16x32xf32, #tpu.memory_space<vmem>>, vector<16x32xf32>
    tpu.vector_store %arg9[%c0_27, %c0_28], %25 {strides = array<i32>} : memref<16x32xf32, #tpu.memory_space<vmem>>, vector<16x32xf32>,
    return
  }
  func.func @transform_0(%arg0: i32, %arg1: i32) -> (i32, i32) {
    %c0_i32 = arith.constant 0 : i32
    %c0_i32_0 = arith.constant 0 : i32
    return %arg0, %c0_i32 : i32, i32
  }
  func.func @transform_1(%arg0: i32, %arg1: i32) -> (i32, i32) {
    %c0_i32 = arith.constant 0 : i32
    %c0_i32_0 = arith.constant 0 : i32
    return %arg0, %c0_i32 : i32, i32
  }
  func.func @transform_2(%arg0: i32, %arg1: i32) -> (i32, i32) {
    %c0_i32 = arith.constant 0 : i32
    %c0_i32_0 = arith.constant 0 : i32
    return %arg0, %c0_i32 : i32, i32
  }
  func.func @transform_3(%arg0: i32, %arg1: i32) -> (i32, i32, i32) {
    %c0_i32 = arith.constant 0 : i32
    %c0_i32_0 = arith.constant 0 : i32
    %c0_i32_1 = arith.constant 0 : i32
    return %c0_i32, %c0_i32_0, %arg1 : i32, i32, i32
  }
  func.func @transform_4(%arg0: i32, %arg1: i32) -> (i32, i32, i32) {
    %c0_i32 = arith.constant 0 : i32
    %c0_i32_0 = arith.constant 0 : i32
    %c0_i32_1 = arith.constant 0 : i32
    return %c0_i32, %c0_i32_0, %arg1 : i32, i32, i32
  }
  func.func @transform_5(%arg0: i32, %arg1: i32) -> (i32, i32) {
    %c0_i32 = arith.constant 0 : i32
    return %arg0, %arg1 : i32, i32
  }
  func.func @transform_6(%arg0: i32, %arg1: i32) -> (i32, i32) {
    %c0_i32 = arith.constant 0 : i32
    return %arg0, %arg1 : i32, i32
  }
  func.func @transform_7(%arg0: i32, %arg1: i32) -> (i32, i32) {
    %c0_i32 = arith.constant 0 : i32
    return %arg0, %arg1 : i32, i32
  }
}

</mosaic_0001>

<bundles_post_ra>
// kernel: tpu_custom_call.1
= control target key start
LH: loop header
LB: loop body
LE: loop exit
PB: predicated region body
PF: predicated region fallthrough
CT: control target
= control target key end

     0   :  { %13 = vsyncpa [#allocation3], 0  ;;  %s920_s0 = inlined_call_operand.hbm [shape: f32[16,32], index: 0, kind: input, shape index: {}]   ;;  %s921_s1 = inlined_call_operand.hbm [shape: f32[16,32], index: 1, kind: input, shape index: {}]   ;;  %s922_s2 = inlined_call_operand.hbm [shape: f32[16,32], index: 2, kind: input, shape index: {}]   ;;  %s923_s3 = inlined_call_operand.hbm [shape: f32[3,32,32], index: 3, kind: input, shape index: {}]   ;;  %s924_s4 = inlined_call_operand.hbm [shape: f32[3,1,32], index: 4, kind: input, shape index: {}]   ;;  %s925_s5 = inlined_call_operand.hbm [shape: f32[16,32], index: 5, kind: output, shape index: {0}]   ;;  %s926_s6 = inlined_call_operand.hbm [shape: f32[16,32], index: 6, kind: output, shape index: {1}]   ;;  %s927_s7 = inlined_call_operand.hbm [shape: f32[16,32], index: 7, kind: output, shape index: {2}]  }
   0x1   :  { %14 = vsyncpa [#allocation6], 0 }
   0x2   :  { %15 = vsyncpa [#allocation9], 0 }
   0x3   :  { %16 = vsyncpa [#allocation4], 0 }
   0x4   :  { %17 = vsyncpa [#allocation13], 0  ;;  %s718_s24 = smov [#allocation5]   ;;  %s719_s26 = smov [#allocation8]  }
   0x5   :  { %s35_s25 = sshll.u32 %s718_s24, 4  ;;  %s59_s27 = sshll.u32 %s719_s26, 4  ;;  %s36_s25 = int_to_ptr.vmem [resolvable:$true] %s35_s25  ;;  %s770_s27 = int_to_ptr.vmem [resolvable:$true] %s59_s27 }
   0x6   :  { %s532_s30 = scalar_lea.hbm %s921_s1, 256 }
   0x7   :  { %p533_p0 = scmp.ne.s32.totalorder %s921_s1, %s532_s30  ;;  %p536_p1 = scmp.lt.u32.totalorder %s532_s30, %s921_s1 }
   0x9   :  { %p538_p2 = pnand %p536_p1, %p533_p0 }
   0xb   :  { %541 = shalt.err (!%p538_p2)
}
   0xc   :  { %s542_s12 = scalar_lea.vmem %s36_s25, 256  ;;  %p547_p4 = scmp.lt.s32.totalorder %s36_s25, %s36_s25 }
   0xd   :  { %p543_p3 = scmp.ne.s32.totalorder %s36_s25, %s542_s12  ;;  %p548_p5 = scmp.lt.s32.totalorder %s542_s12, %s542_s12 }
   0xf   :  { %p549_p6 = por %p548_p5, %p547_p4 }
  0x11   :  { %p550_p7 = pnand %p549_p6, %p543_p3 }
  0x13   :  { %553 = shalt.err (!%p550_p7)
}
  0x14   :  { %s720_s13 = smov 128   ;;  %s721_s14 = smov 8  }
  0x15   :  { %41 = dma.hbm_to_vmem [thread:$0]  %s921_s1, 256, %s36_s25, [#allocation6], %s720_s13, %s720_s13, %s721_s14  }
  0x16   :  { %s554_s19 = scalar_lea.hbm %s923_s3, 1536 }
  0x17   :  { %p555_p8 = scmp.ne.s32.totalorder %s923_s3, %s554_s19  ;;  %p558_p9 = scmp.lt.u32.totalorder %s554_s19, %s923_s3 }
  0x19   :  { %p560_p10 = pnand %p558_p9, %p555_p8 }
  0x1b   :  { %563 = shalt.err (!%p560_p10)
}
  0x1c   :  { %s564_s24 = scalar_lea.vmem %s770_s27, 1536  ;;  %p569_p12 = scmp.lt.s32.totalorder %s770_s27, %s770_s27 }
  0x1d   :  { %p565_p11 = scmp.ne.s32.totalorder %s770_s27, %s564_s24  ;;  %p570_p13 = scmp.lt.s32.totalorder %s564_s24, %s564_s24 }
  0x1f   :  { %p571_p0 = por %p570_p13, %p569_p12 }
  0x21   :  { %p572_p1 = pnand %p571_p0, %p565_p11 }
  0x23   :  { %575 = shalt.err (!%p572_p1)
}
  0x24   :  { %65 = dma.hbm_to_vmem [thread:$0]  %s923_s3, 1536, %s770_s27, [#allocation9], %s720_s13, %s720_s13, %s721_s14  }
  0x25   :  { %s722_s26 = smov [#allocation2]   ;;  %s723_s29 = smov [#allocation7]  }
  0x26   :  { %s23_s28 = sshll.u32 %s722_s26, 4  ;;  %s47_s30 = sshll.u32 %s723_s29, 4  ;;  %s24_s28 = int_to_ptr.vmem [resolvable:$true] %s23_s28  ;;  %s807_s30 = int_to_ptr.vmem [resolvable:$true] %s47_s30 }
  0x27   :  { %s576_s10 = scalar_lea.hbm %s920_s0, 256 }
  0x28   :  { %p577_p2 = scmp.ne.s32.totalorder %s920_s0, %s576_s10  ;;  %p580_p3 = scmp.lt.u32.totalorder %s576_s10, %s920_s0 }
  0x2a   :  { %p582_p4 = pnand %p580_p3, %p577_p2 }
  0x2c   :  { %585 = shalt.err (!%p582_p4)
}
  0x2d   :  { %s586_s3 = scalar_lea.vmem %s24_s28, 256  ;;  %p591_p6 = scmp.lt.s32.totalorder %s24_s28, %s24_s28 }
  0x2e   :  { %p587_p5 = scmp.ne.s32.totalorder %s24_s28, %s586_s3  ;;  %p592_p7 = scmp.lt.s32.totalorder %s586_s3, %s586_s3 }
  0x30   :  { %p593_p8 = por %p592_p7, %p591_p6 }
  0x32   :  { %p594_p9 = pnand %p593_p8, %p587_p5 }
  0x34   :  { %597 = shalt.err (!%p594_p9)
}
  0x35   :  { %29 = dma.hbm_to_vmem [thread:$0]  %s920_s0, 256, %s24_s28, [#allocation3], %s720_s13, %s720_s13, %s721_s14  }
  0x36   :  { %s598_s20 = scalar_lea.hbm %s922_s2, 256 }
  0x37   :  { %p599_p10 = scmp.ne.s32.totalorder %s922_s2, %s598_s20  ;;  %p602_p11 = scmp.lt.u32.totalorder %s598_s20, %s922_s2 }
  0x39   :  { %p604_p12 = pnand %p602_p11, %p599_p10 }
  0x3b   :  { %607 = shalt.err (!%p604_p12)
}
  0x3c   :  { %s608_s1 = scalar_lea.vmem %s807_s30, 256  ;;  %p613_p0 = scmp.lt.s32.totalorder %s807_s30, %s807_s30 }
  0x3d   :  { %p609_p13 = scmp.ne.s32.totalorder %s807_s30, %s608_s1  ;;  %p614_p1 = scmp.lt.s32.totalorder %s608_s1, %s608_s1 }
  0x3f   :  { %p615_p2 = por %p614_p1, %p613_p0 }
  0x41   :  { %p616_p3 = pnand %p615_p2, %p609_p13 }
  0x43   :  { %619 = shalt.err (!%p616_p3)
}
  0x44   :  { %53 = dma.hbm_to_vmem [thread:$0]  %s922_s2, 256, %s807_s30, [#allocation6], %s720_s13, %s720_s13, %s721_s14  }
  0x45   :  { %s724_s26 = smov [#allocation10]   ;;  %s620_s9 = scalar_lea.hbm %s924_s4, 48 }
  0x46   :  { %s71_s28 = sshll.u32 %s724_s26, 4  ;;  %p621_p4 = scmp.ne.s32.totalorder %s924_s4, %s620_s9  ;;  %s72_s28 = int_to_ptr.vmem [resolvable:$true] %s71_s28 }
  0x47   :  { %p624_p5 = scmp.lt.u32.totalorder %s620_s9, %s924_s4 }
  0x49   :  { %p626_p6 = pnand %p624_p5, %p621_p4 }
  0x4b   :  { %629 = shalt.err (!%p626_p6)
}
  0x4c   :  { %s630_s16 = scalar_lea.vmem %s72_s28, 48  ;;  %s634_s2 = scalar_lea.vmem %s72_s28, 64 }
  0x4d   :  { %p631_p7 = scmp.ne.s32.totalorder %s72_s28, %s630_s16  ;;  %p635_p8 = scmp.lt.s32.totalorder %s72_s28, %s72_s28 }
  0x4e   :  { %p636_p9 = scmp.lt.s32.totalorder %s634_s2, %s630_s16 }
  0x50   :  { %p637_p10 = por %p636_p9, %p635_p8 }
  0x52   :  { %p638_p11 = pnand %p637_p10, %p631_p7 }
  0x54   :  { %641 = shalt.err (!%p638_p11)
}
  0x55   :  { %s725_s30 = smov 16   ;;  %s726_s3 = smov 1  }
  0x56   :  { %77 = dma.hbm_to_vmem [thread:$0]  %s924_s4, 48, %s72_s28, [#allocation9], %s725_s30, %s725_s30, %s726_s3  }
  0x57   :  { %708 = dma.done.wait [#allocation3], 256  }
  0x58   :  { %709 = vsyncadd [#allocation3], 4294967040 }
  0x59   :  { %710 = dma.done.wait [#allocation6], 512  }
  0x5a   :  { %711 = vsyncadd [#allocation6], 4294966784 }
  0x5b   :  { %712 = dma.done.wait [#allocation9], 1584  }
  0x5c   :  { %713 = vsyncadd [#allocation9], 4294965712  ;;  %v95_v0 = vld [vmem:[#allocation8] sm:$0xff]  ;;  %v96_v1 = vld [vmem:[#allocation8 + $0x8] sm:$0xff]  ;;  %vm106_vm0 = vcmask 261120   ;;  %s727_s4 = smov [#allocation11]  }
  0x5d   :  { %v97_v2 = vld [vmem:[#allocation8 + $0x10] sm:$0xff]  ;;  %v496_v3 = vpack.c.bf16 %v96_v1, %v95_v0  ;;  %v98_v4 = vld [vmem:[#allocation8 + $0x18] sm:$0xff]  ;;  %v193_v5 = vld [vmem:[#allocation8 + $0x20] sm:$0xff]  ;;  %s391_s18 = sshll.u32 %s727_s4, 4  ;;  %s728_s19 = smov [#allocation12]   ;;  %s392_s18 = int_to_ptr.vmem [resolvable:$true] %s391_s18 }
  0x5e   :  { %v194_v6 = vld [vmem:[#allocation8 + $0x28] sm:$0xff]  ;;  %v500_v7 = vpack.c.bf16 %v98_v4, %v97_v2  ;;  %v93_v9 = vld [vmem:[#allocation2] sm:$0xff]  ;;  %v291_v10 = vld [vmem:[#allocation8 + $0x40] sm:$0xff]  ;;  %s403_s20 = sshll.u32 %s728_s19, 4  ;;  %s642_s21 = scalar_lea.vmem %s392_s18, 256  ;;  %s863_s20 = int_to_ptr.vmem [resolvable:$true] %s403_s20 }
  0x5f   :  { %v504_v8 = vpack.c.bf16 %v194_v6, %v193_v5  ;;  %497 = vmatprep.subr.bf16.mxu0 %v496_v3  ;;  %471 = vmatprep.mubr.msk.f32.mxu0 %vm106_vm0, %v93_v9  ;;  %v292_v11 = vld [vmem:[#allocation8 + $0x48] sm:$0xff]  ;;  %v195_v12 = vld [vmem:[#allocation8 + $0x30] sm:$0xff]  ;;  %v196_v13 = vld [vmem:[#allocation8 + $0x38] sm:$0xff]  ;;  %p643_p12 = scmp.ne.s32.totalorder %s392_s18, %s642_s21  ;;  %p647_p13 = scmp.lt.s32.totalorder %s392_s18, %s392_s18 }
  0x60   :  { %499 = vmatpush3.bf16.msra.mxu0 %v496_v3  ;;  %v508_v14 = vpack.c.bf16 %v196_v13, %v195_v12  ;;  %v190_v15 = vld [vmem:[#allocation5] sm:$0xff]  ;;  %v512_v16 = vpack.c.bf16 %v292_v11, %v291_v10  ;;  %v293_v17 = vld [vmem:[#allocation8 + $0x50] sm:$0xff]  ;;  %v294_v18 = vld [vmem:[#allocation8 + $0x58] sm:$0xff]  ;;  %p648_p0 = scmp.lt.s32.totalorder %s642_s21, %s642_s21 }
  0x61   :  { %505 = vmatprep.subr.bf16.mxu1 %v504_v8  ;;  %501 = vmatprep.subr.bf16.mxu0 %v500_v7  ;;  %v94_v19 = vld [vmem:[#allocation2 + $0x8] sm:$0xff]  ;;  %v516_v20 = vpack.c.bf16 %v294_v18, %v293_v17  ;;  %v191_v21 = vld [vmem:[#allocation5 + $0x8] sm:$0xff]  ;;  %v288_v22 = vld [vmem:[#allocation7] sm:$0xff] }
  0x62   :  { %507 = vmatpush3.bf16.msra.mxu1 %v504_v8  ;;  %482 = vmatprep.mubr.msk.f32.mxu1 %vm106_vm0, %v190_v15  ;;  %v289_v23 = vld [vmem:[#allocation7 + $0x8] sm:$0xff]  ;;  %v436_v24 = vld [vmem:[#allocation10] ss:$0 sm:$0xff]  ;;  %v439_v25 = vld [vmem:[#allocation10 + $0x1] ss:$0 sm:$0xff]  ;;  %p649_p1 = por %p648_p0, %p647_p13 }
  0x63   :  { %509 = vmatprep.subr.bf16.mxu1 %v508_v14 }
  0x64   :  { %503 = vmatpush3.bf16.msra.mxu0 %v500_v7  ;;  %p650_p2 = pnand %p649_p1, %p643_p12 }
  0x65   :  { %513 = vmatprep.subr.bf16.mxu0 %v512_v16 }
  0x66   :  { %511 = vmatpush3.bf16.msra.mxu1 %v508_v14 }
  0x67   :  { %472 = vmatmul.mubr.msk.f32.vlgmr.msra.gmra.mrb[0].mxu0 %vm106_vm0, %v94_v19 }
  0x68   :  { %515 = vmatpush3.bf16.msra.mxu0 %v512_v16  ;;  %493 = vmatprep.mubr.msk.f32.mxu0 %vm106_vm0, %v288_v22 }
  0x69   :  { %483 = vmatmul.mubr.msk.f32.vlgmr.msra.gmra.mrb[0].mxu1 %vm106_vm0, %v191_v21  ;;  %517 = vmatprep.subr.bf16.mxu0 %v516_v20 }
  0x6c   :  { %519 = vmatpush3.bf16.msra.mxu0 %v516_v20 }
  0x6f   :  { %494 = vmatmul.mubr.msk.f32.vlgmr.msra.gmra.mrb[2].mxu0 %vm106_vm0, %v289_v23 }
 0x13a   :  { %v473_v26 = vpop.f32.mrb[0].mxu0 }
 0x13b   :  { %v185_v27 = vadd.f32 %v473_v26, %v436_v24  ;;  %v179_v28 = vpop.f32.mrb[1].mxu0 }
 0x13c   :  { %v484_v29 = vpop.f32.mrb[0].mxu1  ;;  %v180_v30 = vadd.f32 %v436_v24, %v179_v28 }
 0x13d   :  { %v283_v31 = vadd.f32 %v484_v29, %v439_v25  ;;  %v277_v32 = vpop.f32.mrb[1].mxu1  ;;  %189 = vst.msk [vmem:[#allocation11 + $0x8] sm:$0xff] %vm106_vm0, %v185_v27 }
 0x13e   :  { %v278_v33 = vadd.f32 %v439_v25, %v277_v32  ;;  %188 = vst.msk [vmem:[#allocation11] sm:$0xff] %vm106_vm0, %v180_v30 }
 0x13f   :  { %287 = vst.msk [vmem:[#allocation12 + $0x8] sm:$0xff] %vm106_vm0, %v283_v31 }
 0x140   :  { %286 = vst.msk [vmem:[#allocation12] sm:$0xff] %vm106_vm0, %v278_v33 }
 0x141   :  { %653 = shalt.err (!%p650_p2)
}
 0x142   :  { %s654_s24 = scalar_lea.hbm %s925_s5, 256 }
 0x143   :  { %p655_p3 = scmp.ne.s32.totalorder %s925_s5, %s654_s24  ;;  %p658_p4 = scmp.lt.u32.totalorder %s654_s24, %s925_s5 }
 0x145   :  { %p660_p5 = pnand %p658_p4, %p655_p3 }
 0x147   :  { %663 = shalt.err (!%p660_p5)
}
 0x148   :  { %397 = dma.vmem_to_hbm [thread:$0]  %s392_s18, 256, %s925_s5, [#allocation4], %s720_s13, %s720_s13, %s721_s14   ;;  %v442_v34 = vld [vmem:[#allocation10 + $0x2] ss:$0 sm:$0xff] }
 0x149   :  { %s664_s8 = scalar_lea.vmem %s863_s20, 256  ;;  %p669_p7 = scmp.lt.s32.totalorder %s863_s20, %s863_s20 }
 0x14a   :  { %p665_p6 = scmp.ne.s32.totalorder %s863_s20, %s664_s8  ;;  %p670_p8 = scmp.lt.s32.totalorder %s664_s8, %s664_s8 }
 0x14c   :  { %p671_p9 = por %p670_p8, %p669_p7 }
 0x14e   :  { %p672_p10 = pnand %p671_p9, %p665_p6 }
 0x150   :  { %675 = shalt.err (!%p672_p10)
}
 0x151   :  { %s676_s11 = scalar_lea.hbm %s926_s6, 256 }
 0x152   :  { %p677_p11 = scmp.ne.s32.totalorder %s926_s6, %s676_s11  ;;  %p680_p12 = scmp.lt.u32.totalorder %s676_s11, %s926_s6 }
 0x154   :  { %p682_p13 = pnand %p680_p12, %p677_p11 }
 0x156   :  { %685 = shalt.err (!%p682_p13)
}
 0x157   :  { %409 = dma.vmem_to_hbm [thread:$0]  %s863_s20, 256, %s926_s6, [#allocation13], %s720_s13, %s720_s13, %s721_s14   ;;  %v495_v35 = vpop.f32.mrb[2].mxu0 }
 0x158   :  { %s729_s3 = smov [#allocation14]   ;;  %v381_v36 = vadd.f32 %v495_v35, %v442_v34  ;;  %v375_v37 = vpop.f32.mrb[3].mxu0 }
 0x159   :  { %s415_s27 = sshll.u32 %s729_s3, 4  ;;  %v376_v38 = vadd.f32 %v442_v34, %v375_v37  ;;  %s416_s27 = int_to_ptr.vmem [resolvable:$true] %s415_s27 }
 0x15a   :  { %385 = vst.msk [vmem:[#allocation14 + $0x8] sm:$0xff] %vm106_vm0, %v381_v36  ;;  %s686_s17 = scalar_lea.vmem %s416_s27, 256  ;;  %p691_p1 = scmp.lt.s32.totalorder %s416_s27, %s416_s27 }
 0x15b   :  { %384 = vst.msk [vmem:[#allocation14] sm:$0xff] %vm106_vm0, %v376_v38  ;;  %p687_p0 = scmp.ne.s32.totalorder %s416_s27, %s686_s17  ;;  %p692_p2 = scmp.lt.s32.totalorder %s686_s17, %s686_s17 }
 0x15d   :  { %p693_p3 = por %p692_p2, %p691_p1 }
 0x15f   :  { %p694_p4 = pnand %p693_p3, %p687_p0 }
 0x161   :  { %697 = shalt.err (!%p694_p4)
}
 0x162   :  { %s698_s18 = scalar_lea.hbm %s927_s7, 256 }
 0x163   :  { %p699_p5 = scmp.ne.s32.totalorder %s927_s7, %s698_s18  ;;  %p702_p6 = scmp.lt.u32.totalorder %s698_s18, %s927_s7 }
 0x165   :  { %p704_p7 = pnand %p702_p6, %p699_p5 }
 0x167   :  { %707 = shalt.err (!%p704_p7)
}
 0x168   :  { %421 = dma.vmem_to_hbm [thread:$0]  %s416_s27, 256, %s927_s7, [#allocation13], %s720_s13, %s720_s13, %s721_s14  }
 0x169   :  { %714 = dma.done.wait [#allocation4], 256  }
 0x16a   :  { %715 = vsyncadd [#allocation4], 4294967040 }
 0x16b   :  { %716 = dma.done.wait [#allocation13], 512  }
 0x16c   :  { %717 = vsyncadd [#allocation13], 4294966784 }
 0x16d   :  { %431 = vsyncpa [#allocation3], 1 }
 0x16e   :  { %432 = vsyncpa [#allocation6], 1 }
 0x16f   :  { %433 = vsyncpa [#allocation9], 1 }
 0x170   :  { %434 = vsyncpa [#allocation4], 1 }
 0x171   :  { %435 = vsyncpa [#allocation13], 1 }

</bundles_post_ra>
